<compile_context>
chip_gen: v7x
topology: tpu7x:2x2x1
jax: 0.10.0
libtpu: 0.0.40
codegen_flags: <defaults>
</compile_context>

<pallas_src>
import math

import jax
import jax.numpy as jnp
from jax import lax
from jax.experimental import pallas as pl
from jax.experimental.pallas import tpu as pltpu


_LANE = 128
_SUBLANE = 8
_MAX_PATTERN_LANES = 4096        # cap on flattened lane width (16 KiB/row f32)
_TARGET_BLOCK_BYTES = 4 << 20    # ~4 MiB per output block; x2 double-buffered = 8 MiB
_CHUNK_BYTES = 64 << 10          # ~64 KiB (16 f32 vregs) materialized per inner store
_PALLAS_MIN_BYTES = 1 << 20      # below this, plain XLA broadcast beats a kernel launch


def _round_up(x, m):
    return -(-x // m) * m


def _round_down(x, m):
    return (x // m) * m


def _make_bcast_kernel(chunk_rows):
    def kernel(pattern_ref, out_ref):
        # pattern_ref: (1, C) VMEM, constant index_map -> DMA'd once, stays resident.
        # out_ref:     (tile_r, C) VMEM output block; tile_r is a multiple of chunk_rows.
        tr, c = out_ref.shape
        # Hoisted small pattern tile (sublane-broadcast of one row); the loop below
        # only issues dense stores -- HBM writeback DMA is the real bottleneck.
        tile = jnp.broadcast_to(pattern_ref[...], (chunk_rows, c))

        def body(i, carry):
            r0 = pl.multiple_of(i * chunk_rows, chunk_rows)
            out_ref[pl.ds(r0, chunk_rows), :] = tile
            return carry

        lax.fori_loop(0, tr // chunk_rows, body, 0, unroll=False)

    return kernel


def _expand_a_pallas(a, bs, num_samples):
    """Pallas broadcast of a (num_vars,) buffer to (bs, num_samples, num_vars)."""
    num_vars = a.shape[0]
    rows = bs * num_samples
    total = rows * num_vars
    itemsize = jnp.dtype(a.dtype).itemsize

    # Lane-dense flat layout: C is a multiple of 128 (dense, unmasked stores) and of
    # num_vars (every flat row == `a` tiled, so one pattern row covers everything).
    c = math.lcm(num_vars, _LANE)
    if c > _MAX_PATTERN_LANES:
        # Large/awkward num_vars (lcm blows up): fall back to C = num_vars.  The block
        # last dim then equals the full array dim (allowed); lane waste < 128/num_vars.
        c = num_vars

    # Inner-store chunk: small enough to live in a handful of vregs (no spills).
    chunk = max(_SUBLANE, _round_down(_CHUNK_BYTES // (c * itemsize), _SUBLANE))

    # Block rows: target ~4 MiB of output per block, as a multiple of the chunk so the
    # in-kernel loop has no tail.
    flat_rows = pl.cdiv(total, c)
    tile_r = max(chunk, _round_down(_TARGET_BLOCK_BYTES // (c * itemsize), chunk))
    if flat_rows > 2 * chunk:
        # Ensure >= 2 grid blocks when there is enough work so v7x's 2 TensorCores
        # can split the writeback.
        tile_r = min(tile_r, _round_up(pl.cdiv(flat_rows, 2), chunk))
    tile_r = min(tile_r, _round_up(flat_rows, chunk))

    grid_n = pl.cdiv(flat_rows, tile_r)
    padded_rows = grid_n * tile_r  # over-allocate to whole blocks; sliced off below

    # One-time tiny XLA op outside the kernel: the repeating (1, C) pattern row.
    pattern = jnp.tile(a, c // num_vars).reshape(1, c)

    out = pl.pallas_call(
        _make_bcast_kernel(chunk),
        out_shape=jax.ShapeDtypeStruct((padded_rows, c), a.dtype),
        grid=(grid_n,),
        in_specs=[
            # Constant index_map: pattern row loaded once, resident across the grid.
            pl.BlockSpec((1, c), lambda i: (0, 0)),
        ],
        out_specs=pl.BlockSpec((tile_r, c), lambda i: (i, 0)),
        compiler_params=pltpu.CompilerParams(
            dimension_semantics=("parallel",)),
        # TODO(synk): on v7x, pltpu.CORE_PARALLEL (or an explicit core_map) would force
        # the row axis across both TensorCores; "parallel" is kept for v5e/v6e portability.
    )(pattern)

    # Free metadata ops: flatten, drop the lane/row padding, restore the module's rank.
    return out.reshape(-1)[:total].reshape(bs, num_samples, num_vars)


def empty_ab_encoder(x: jax.Array, a: jax.Array, b: jax.Array,
                     num_samples: int = 0, *, force_pallas: bool = False):
    """Pallas equivalent of EmptyABEncoder.forward.

    x: (bs, C, H, W) -- only bs is used (statically, like the PyTorch code)
    a: (num_vars,) buffer (zeros in the module);  b: () buffer (one in the module)

    The PyTorch module expands the buffers to (bs, 0, num_vars) / (bs, 0) -- zero-element
    outputs.  num_samples defaults to 0 to match that exactly; the broadcast path handles
    the general num_samples >= 1 case (Pallas kernel for large outputs, XLA otherwise).
    """
    bs = x.shape[0]
    num_vars = a.shape[0]

    # b-output: tiny / trivially fused broadcast -- never worth a kernel (perf review).
    b_out = jnp.broadcast_to(b, (bs, num_samples))

    if num_samples == 0:
        # Zero-element outputs: nothing to compute or DMA, so no kernel launch.
        # TODO(synk): a size-0 expand has no Pallas equivalent (there are no blocks to write).
        a_out = jnp.broadcast_to(a[None, None, :], (bs, 0, num_vars))
        return a_out, b_out

    total_bytes = bs * num_samples * num_vars * jnp.dtype(a.dtype).itemsize
    if total_bytes < _PALLAS_MIN_BYTES and not force_pallas:
        # Small output: custom-call launch + ~0.35us/grid-step overhead loses to XLA's
        # broadcast/fill fusion, and this path never reads `a` from HBM inside a kernel.
        a_out = jnp.broadcast_to(a[None, None, :], (bs, num_samples, num_vars))
        return a_out, b_out

    return _expand_a_pallas(a, bs, num_samples), b_out


if __name__ == "__main__":
    key = jax.random.PRNGKey(0)

    # Small shapes consistent with the module's forward (only bs matters).
    bs, C, H, W = 2, 4, 16, 16
    num_vars = 16

    x = jax.random.normal(key, (bs, C, H, W), dtype=jnp.float32)

    # Deterministic buffers, exactly as in __init__: a = zeros(num_vars), b = ones(()).
    a = jnp.zeros((num_vars,), dtype=jnp.float32)
    b = jnp.ones((), dtype=jnp.float32)

    # 1) Exact module semantics: expand(bs, 0, -1) / expand(bs, 0) -> empty outputs.
    a_empty, b_empty = empty_ab_encoder(x, a, b)
    jax.block_until_ready((a_empty, b_empty))
    assert a_empty.shape == (bs, 0, num_vars) and a_empty.dtype == jnp.float32
    assert b_empty.shape == (bs, 0) and b_empty.dtype == jnp.float32

    # 2) Small nonzero-sample broadcast -> XLA fast path (no kernel launch).
    ns = 4
    a_out, b_out = empty_ab_encoder(x, a, b, num_samples=ns)
    jax.block_until_ready((a_out, b_out))
    assert a_out.shape == (bs, ns, num_vars) and b_out.shape == (bs, ns)
    assert bool(jnp.all(a_out == 0.0)) and bool(jnp.all(b_out == 1.0))

    # 3) Exercise the Pallas broadcast kernel (forced, small shapes, non-trivial `a`
    #    so the broadcast itself is verified).  num_vars = 16 -> lane-dense C = 128.
    ns = 8
    a_rand = jax.random.normal(jax.random.PRNGKey(0), (num_vars,), dtype=jnp.float32)
    a_out, b_out = empty_ab_encoder(x, a_rand, b, num_samples=ns, force_pallas=True)
    jax.block_until_ready((a_out, b_out))
    a_expect = jnp.broadcast_to(a_rand[None, None, :], (bs, ns, num_vars))
    b_expect = jnp.broadcast_to(b[None, None], (bs, ns))
    assert a_out.shape == a_expect.shape and a_out.dtype == jnp.float32
    assert b_out.shape == b_expect.shape and b_out.dtype == jnp.float32
    assert bool(jnp.all(a_out == a_expect)) and bool(jnp.all(b_out == b_expect))

    # 4) Kernel again with num_vars not dividing 128 (C = lcm(48,128) = 384): checks the
    #    flat-slab padding + slicing path drops no tail elements.
    nv2, ns2 = 48, 8
    a2 = jax.random.normal(jax.random.PRNGKey(1), (nv2,), dtype=jnp.float32)
    a_out2, b_out2 = empty_ab_encoder(x, a2, b, num_samples=ns2, force_pallas=True)
    jax.block_until_ready((a_out2, b_out2))
    a_expect2 = jnp.broadcast_to(a2[None, None, :], (bs, ns2, nv2))
    assert a_out2.shape == a_expect2.shape
    assert bool(jnp.all(a_out2 == a_expect2))
    assert bool(jnp.all(b_out2 == 1.0))

    print("KERNEL_OK")
</pallas_src>

<mosaic_0001>
module attributes {stable_mosaic.version = 11 : i64} {
  func.func @kernel(%arg0: i32, %arg1: memref<1x128xf32, #tpu.memory_space<vmem>>, %arg2: memref<128x128xf32, #tpu.memory_space<vmem>>) attributes {dimension_semantics = [#tpu.dimension_semantics<parallel>], iteration_bounds = array<i64: 1>, scalar_prefetch = 0 : i64, scratch_operands = 0 : i64, tpu.core_type = #tpu.core_type<tc>, window_params = [{pipeline_mode = #tpu.pipeline_mode<synchronous>, transform_indices = @transform_0, window_bounds = array<i64: 1, 128>}, {transform_indices = @transform_1, window_bounds = array<i64: 128, 128>}]} {
    %c0 = arith.constant 0 : index
    %c0_0 = arith.constant 0 : index
    %0 = vector.load %arg1[%c0, %c0_0] : memref<1x128xf32, #tpu.memory_space<vmem>>, vector<1x128xf32>
    %1 = vector.shape_cast %0 : vector<1x128xf32> to vector<1x128xf32>
    %2 = vector.broadcast %1 : vector<1x128xf32> to vector<128x128xf32>
    %c0_i32 = arith.constant 0 : i32
    %c128_i32 = arith.constant 128 : i32
    %3 = arith.muli %c0_i32, %c128_i32 : i32
    %4 = tpu.assume_multiple %3, 128 : i32
    %5 = arith.index_cast %4 : i32 to index
    %c0_1 = arith.constant 0 : index
    %6 = vector.load %arg2[%5, %c0_1] : memref<128x128xf32, #tpu.memory_space<vmem>>, vector<128x128xf32>
    tpu.vector_store %arg2[%5, %c0_1], %2 {strides = array<i32>} : memref<128x128xf32, #tpu.memory_space<vmem>>, vector<128x128xf32>,
    %c1_i32 = arith.constant 1 : i32
    return
  }
  func.func @transform_0(%arg0: i32) -> (i32, i32) {
    %c0_i32 = arith.constant 0 : i32
    %c0_i32_0 = arith.constant 0 : i32
    %c0_i32_1 = arith.constant 0 : i32
    return %c0_i32, %c0_i32_0 : i32, i32
  }
  func.func @transform_1(%arg0: i32) -> (i32, i32) {
    %c0_i32 = arith.constant 0 : i32
    %c0_i32_0 = arith.constant 0 : i32
    return %arg0, %c0_i32 : i32, i32
  }
}

</mosaic_0001>

<bundles_post_ra>
// kernel: tpu_custom_call.1
= control target key start
LH: loop header
LB: loop body
LE: loop exit
PB: predicated region body
PF: predicated region fallthrough
CT: control target
= control target key end

     0   :  { %6 = vsyncpa [#allocation3], 0  ;;  %s159_s0 = inlined_call_operand.hbm [shape: f32[1,128], index: 0, kind: input, shape index: {}]   ;;  %s160_s1 = inlined_call_operand.hbm [shape: f32[128,128], index: 1, kind: output, shape index: {}]  }
   0x1   :  { %7 = vsyncpa [#allocation4], 0  ;;  %s114_s6 = smov [#allocation2]   ;;  %s66_s10 = scalar_lea.hbm %s159_s0, 16 }
   0x2   :  { %s14_s7 = sshll.u32 %s114_s6, 4  ;;  %p67_p0 = scmp.ne.s32.totalorder %s159_s0, %s66_s10  ;;  %s15_s7 = int_to_ptr.vmem [resolvable:$true] %s14_s7 }
   0x3   :  { %p70_p1 = scmp.lt.u32.totalorder %s66_s10, %s159_s0 }
   0x5   :  { %p72_p2 = pnand %p70_p1, %p67_p0 }
   0x7   :  { %75 = shalt.err (!%p72_p2)
}
   0x8   :  { %s76_s15 = scalar_lea.vmem %s15_s7, 16  ;;  %s80_s16 = scalar_lea.vmem %s15_s7, 32 }
   0x9   :  { %p77_p3 = scmp.ne.s32.totalorder %s15_s7, %s76_s15  ;;  %p81_p4 = scmp.lt.s32.totalorder %s15_s7, %s15_s7 }
   0xa   :  { %p82_p5 = scmp.lt.s32.totalorder %s80_s16, %s76_s15 }
   0xc   :  { %p83_p6 = por %p82_p5, %p81_p4 }
   0xe   :  { %p84_p7 = pnand %p83_p6, %p77_p3 }
  0x10   :  { %87 = shalt.err (!%p84_p7)
}
  0x11   :  { %17 = dma.hbm_to_vmem [thread:$0]  %s159_s0, 16, %s15_s7, [#allocation3]  }
  0x12   :  { %110 = dma.done.wait [#allocation3], 16  }
  0x13   :  { %111 = vsyncadd [#allocation3], 4294967280  ;;  %s115_s19 = smov [#allocation5]   ;;  %v61_v0 = vld [vmem:[#allocation2] ss:$0 sm:$0xff] }
  0x14   :  { %s49_s20 = sshll.u32 %s115_s19, 4  ;;  %28 = vst [vmem:[#allocation5] sm:$0xff] %v61_v0  ;;  %29 = vst [vmem:[#allocation5 + $0x8] sm:$0xff] %v61_v0  ;;  %s140_s20 = int_to_ptr.vmem [resolvable:$true] %s49_s20 }
  0x15   :  { %30 = vst [vmem:[#allocation5 + $0x10] sm:$0xff] %v61_v0  ;;  %31 = vst [vmem:[#allocation5 + $0x18] sm:$0xff] %v61_v0  ;;  %s88_s0 = scalar_lea.vmem %s140_s20, 2048  ;;  %p93_p9 = scmp.lt.s32.totalorder %s140_s20, %s140_s20 }
  0x16   :  { %32 = vst [vmem:[#allocation5 + $0x20] sm:$0xff] %v61_v0  ;;  %33 = vst [vmem:[#allocation5 + $0x28] sm:$0xff] %v61_v0  ;;  %p89_p8 = scmp.ne.s32.totalorder %s140_s20, %s88_s0  ;;  %p94_p10 = scmp.lt.s32.totalorder %s88_s0, %s88_s0 }
  0x17   :  { %34 = vst [vmem:[#allocation5 + $0x30] sm:$0xff] %v61_v0  ;;  %35 = vst [vmem:[#allocation5 + $0x38] sm:$0xff] %v61_v0 }
  0x18   :  { %36 = vst [vmem:[#allocation5 + $0x40] sm:$0xff] %v61_v0  ;;  %37 = vst [vmem:[#allocation5 + $0x48] sm:$0xff] %v61_v0  ;;  %p95_p11 = por %p94_p10, %p93_p9 }
  0x19   :  { %38 = vst [vmem:[#allocation5 + $0x50] sm:$0xff] %v61_v0  ;;  %39 = vst [vmem:[#allocation5 + $0x58] sm:$0xff] %v61_v0 }
  0x1a   :  { %40 = vst [vmem:[#allocation5 + $0x60] sm:$0xff] %v61_v0  ;;  %41 = vst [vmem:[#allocation5 + $0x68] sm:$0xff] %v61_v0  ;;  %p96_p12 = pnand %p95_p11, %p89_p8 }
  0x1b   :  { %42 = vst [vmem:[#allocation5 + $0x70] sm:$0xff] %v61_v0  ;;  %43 = vst [vmem:[#allocation5 + $0x78] sm:$0xff] %v61_v0 }
  0x1c   :  { %99 = shalt.err (!%p96_p12)
}
  0x1d   :  { %s100_s23 = scalar_lea.hbm %s160_s1, 2048 }
  0x1e   :  { %p101_p13 = scmp.ne.s32.totalorder %s160_s1, %s100_s23  ;;  %p104_p0 = scmp.lt.u32.totalorder %s100_s23, %s160_s1 }
  0x20   :  { %p106_p1 = pnand %p104_p0, %p101_p13 }
  0x22   :  { %109 = shalt.err (!%p106_p1)
}
  0x23   :  { %s116_s28 = smov 128   ;;  %s117_s29 = smov 8  }
  0x24   :  { %55 = dma.vmem_to_hbm [thread:$0]  %s140_s20, 2048, %s160_s1, [#allocation4], %s116_s28, %s116_s28, %s117_s29  }
  0x25   :  { %112 = dma.done.wait [#allocation4], 2048  }
  0x26   :  { %113 = vsyncadd [#allocation4], 4294965248 }
  0x27   :  { %59 = vsyncpa [#allocation3], 1 }
  0x28   :  { %60 = vsyncpa [#allocation4], 1 }

</bundles_post_ra>
